<compile_context>
chip_gen: v7x
topology: tpu7x:2x2x1
jax: 0.10.0
libtpu: 0.0.40
codegen_flags: <defaults>
</compile_context>

<pallas_src>
import jax
import jax.numpy as jnp
import numpy as np
from jax.experimental import pallas as pl
from jax.experimental.pallas import tpu as pltpu


# ----------------------------- kernels ------------------------------------ #

def _ordinal_logsoftmax_kernel(x_ref, o_ref):
    """Training path: pairwise log_softmax.

    x_ref, o_ref: (bn, 2, ord_num, TILE_HW).  With a = x[:,0], b = x[:,1]:
      log_softmax = (a - lse, b - lse),  lse = a + softplus(b - a)
      => out0 = -softplus(d), out1 = d - softplus(d), d = b - a.
    """
    a = x_ref[:, 0, :, :].astype(jnp.float32)
    b = x_ref[:, 1, :, :].astype(jnp.float32)
    d = b - a
    # Stable softplus: max(d, 0) + log(1 + exp(-|d|))  -> 1 exp + 1 log on EUP.
    sp = jnp.maximum(d, 0.0) + jnp.log(1.0 + jnp.exp(-jnp.abs(d)))
    o_ref[:, 0, :, :] = (-sp).astype(o_ref.dtype)
    o_ref[:, 1, :, :] = (d - sp).astype(o_ref.dtype)


def _ordinal_pdf_kernel(x_ref, o_ref):
    """Eval path: pdf = diff(softmax(pair)[1]) along the ord axis.

    x_ref: (bn, 2, ord_num, TILE_HW)   o_ref: (bn, ord_num - 1, TILE_HW)
    softmax over the pair, index 1  ==  sigmoid(x1 - x0)
                                    ==  0.5 * (tanh((x1 - x0)/2) + 1)   (EUP).
    """
    d = x_ref[:, 1, :, :].astype(jnp.float32) - x_ref[:, 0, :, :].astype(jnp.float32)
    p = 0.5 * (jnp.tanh(0.5 * d) + 1.0)
    # Static sublane-slice diff (ord axis is fully resident in the tile).
    o_ref[...] = (p[:, 1:, :] - p[:, :-1, :]).astype(o_ref.dtype)


# ----------------------------- planning ----------------------------------- #

def _cdiv(a, b):
    return (a + b - 1) // b


def _round_up(x, m):
    return _cdiv(x, m) * m


def _vmem_budgets():
    """(tile_budget_bytes, vmem_limit_bytes), generation aware."""
    try:
        cap = int(pltpu.get_tpu_info().vmem_capacity_bytes)
    except Exception:
        cap = 64 * 1024 * 1024          # conservative: works on every generation
    cap = max(cap, 32 * 1024 * 1024)
    # Leave headroom under the physical capacity for Mosaic internal scratch.
    limit = min(cap - 8 * 1024 * 1024, 96 * 1024 * 1024)
    # Double-buffered (in + out) working-set budget for the block planner:
    #   128 MiB VMEM (v5e/v6e) -> 72 MiB,  64 MiB VMEM (v7x) -> ~42 MiB.
    budget = (limit * 3) // 4
    return budget, limit


def _plan_blocks(N, HW, in_rows_padded, out_rows_padded, dtype_bytes,
                 budget_bytes, target_step_bytes=4 * 1024 * 1024):
    """Pick (bn, tile_hw): batch elements per block and lane-dense HW tile.

    `*_rows_padded` are sublane-padded row counts, so `budget_bytes` bounds the
    real double-buffered VMEM footprint (2 in-buffers + 2 out-buffers).
    """
    hw_pad = _round_up(HW, 128)
    per_lane = (in_rows_padded + out_rows_padded) * dtype_bytes   # 1 buffer, bn=1
    # Largest 128-multiple tile whose double-buffered working set fits (bn=1).
    max_lanes = max(128, (budget_bytes // (2 * per_lane)) // 128 * 128)
    tile = min(hw_pad, max_lanes)

    bn = 1
    if tile == hw_pad:
        # Whole spatial extent fits in one tile; fold batch elements in until
        # each grid step moves ~target_step_bytes (still within budget).
        per_step = per_lane * tile
        want = max(1, target_step_bytes // max(per_step, 1))
        fit = max(1, budget_bytes // max(2 * per_step, 1))
        bn = int(min(N, want, fit))

    # Keep >= 2 grid steps when possible so both v7x TensorCores get work.
    if _cdiv(N, bn) * _cdiv(HW, tile) == 1:
        if HW > 128:
            tile = _round_up(_cdiv(HW, 2), 128)
        elif N > 1:
            bn = _cdiv(N, 2)
    return int(bn), int(tile)


# ----------------------------- wrapper ------------------------------------ #

def ordinal_regression_forward(x, training=False):
    """x: (N, C, H, W), C even. Mirrors OrdinalRegressionLayer.forward."""
    N, C, H, W = x.shape
    assert C % 2 == 0, "channel count must be even (C = 2 * ord_num)"
    ord_num = C // 2
    HW = H * W
    itemsize = jnp.dtype(x.dtype).itemsize
    sublane = 8 * max(1, 4 // itemsize)          # 8 for f32, 16 for bf16, ...
    pad_rows = lambda r: _round_up(max(int(r), 1), sublane)

    # Free view of the contiguous NCHW layout: channels [0, ord) -> pair idx 0,
    # channels [ord, C) -> pair idx 1 (matches the PyTorch .view ordering).
    xv = x.reshape(N, 2, ord_num, HW)

    budget, vmem_limit = _vmem_budgets()
    compiler_params = pltpu.CompilerParams(
        dimension_semantics=("parallel", "parallel"),
        vmem_limit_bytes=int(vmem_limit),
    )

    if training:
        in_rows = 2 * pad_rows(ord_num)          # input block sublane rows
        out_rows = 2 * pad_rows(ord_num)         # output block sublane rows
        bn, tile = _plan_blocks(N, HW, in_rows, out_rows, itemsize, budget)
        grid = (_cdiv(N, bn), _cdiv(HW, tile))
        out = pl.pallas_call(
            _ordinal_logsoftmax_kernel,
            out_shape=jax.ShapeDtypeStruct((N, 2, ord_num, HW), x.dtype),
            grid=grid,
            in_specs=[pl.BlockSpec((bn, 2, ord_num, tile),
                                   lambda n, t: (n, 0, 0, t))],
            out_specs=pl.BlockSpec((bn, 2, ord_num, tile),
                                   lambda n, t: (n, 0, 0, t)),
            compiler_params=compiler_params,
        )(xv)
        return out.reshape(N, C, H, W)           # no-copy view back to NCHW

    if ord_num < 2:                              # torch.diff on a size-1 axis -> empty
        return jnp.zeros((N, 0, H, W), dtype=x.dtype)

    in_rows = 2 * pad_rows(ord_num)
    out_rows = pad_rows(ord_num - 1)
    bn, tile = _plan_blocks(N, HW, in_rows, out_rows, itemsize, budget)
    grid = (_cdiv(N, bn), _cdiv(HW, tile))
    pdf = pl.pallas_call(
        _ordinal_pdf_kernel,
        out_shape=jax.ShapeDtypeStruct((N, ord_num - 1, HW), x.dtype),
        grid=grid,
        in_specs=[pl.BlockSpec((bn, 2, ord_num, tile),
                               lambda n, t: (n, 0, 0, t))],
        out_specs=pl.BlockSpec((bn, ord_num - 1, tile),
                               lambda n, t: (n, 0, t)),
        compiler_params=compiler_params,
    )(xv)
    return pdf.reshape(N, ord_num - 1, H, W)


# ----------------------------- reference ---------------------------------- #

def _reference_forward(x, training=False):
    """Pure-JAX reference mirroring the PyTorch code, for verification."""
    N, C, H, W = x.shape
    ord_num = C // 2
    xv = x.reshape(N, 2, ord_num, H, W)
    if training:
        return jax.nn.log_softmax(xv, axis=1).reshape(N, C, H, W)
    p1 = jax.nn.softmax(xv, axis=1)[:, 1]
    return jnp.diff(p1, axis=1)


def _check(x):
    pdf = jax.block_until_ready(ordinal_regression_forward(x, training=False))
    np.testing.assert_allclose(
        np.asarray(pdf), np.asarray(_reference_forward(x, training=False)),
        rtol=1e-5, atol=1e-5)
    prob = jax.block_until_ready(ordinal_regression_forward(x, training=True))
    np.testing.assert_allclose(
        np.asarray(prob), np.asarray(_reference_forward(x, training=True)),
        rtol=1e-5, atol=1e-5)
    return pdf, prob


if __name__ == "__main__":
    key = jax.random.PRNGKey(0)

    # Small primary shape: N=2, C=8 (ord_num=4), 16x16 spatial.
    N, C, H, W = 2, 8, 16, 16
    x = jax.random.normal(key, (N, C, H, W), dtype=jnp.float32)
    pdf, prob = _check(x)
    assert pdf.shape == (N, C // 2 - 1, H, W)
    assert prob.shape == (N, C, H, W)

    # Larger spatial extent: exercises the HW tile axis of the grid.
    x2 = jax.random.normal(jax.random.PRNGKey(1), (2, 16, 64, 64), dtype=jnp.float32)
    _check(x2)

    # Non-128-aligned spatial size: exercises the masked ragged edge block.
    x3 = jax.random.normal(jax.random.PRNGKey(2), (2, 8, 13, 17), dtype=jnp.float32)
    _check(x3)

    print("KERNEL_OK")
</pallas_src>

<mosaic_0001>
module attributes {stable_mosaic.version = 11 : i64} {
  func.func @_ordinal_pdf_kernel(%arg0: i32, %arg1: i32, %arg2: memref<2x2x4x128xf32, #tpu.memory_space<vmem>>, %arg3: memref<2x3x128xf32, #tpu.memory_space<vmem>>) attributes {dimension_semantics = [#tpu.dimension_semantics<parallel>, #tpu.dimension_semantics<parallel>], iteration_bounds = array<i64: 1, 2>, scalar_prefetch = 0 : i64, scratch_operands = 0 : i64, tpu.core_type = #tpu.core_type<tc>, window_params = [{transform_indices = @transform_0, window_bounds = array<i64: 2, 2, 4, 128>}, {transform_indices = @transform_1, window_bounds = array<i64: 2, 3, 128>}]} {
    %c0 = arith.constant 0 : index
    %c1 = arith.constant 1 : index
    %c0_0 = arith.constant 0 : index
    %c0_1 = arith.constant 0 : index
    %0 = vector.load %arg2[%c0, %c1, %c0_0, %c0_1] : memref<2x2x4x128xf32, #tpu.memory_space<vmem>>, vector<2x1x4x128xf32>
    %1 = vector.shape_cast %0 : vector<2x1x4x128xf32> to vector<2x4x128xf32>
    %c0_2 = arith.constant 0 : index
    %c0_3 = arith.constant 0 : index
    %c0_4 = arith.constant 0 : index
    %c0_5 = arith.constant 0 : index
    %2 = vector.load %arg2[%c0_2, %c0_3, %c0_4, %c0_5] : memref<2x2x4x128xf32, #tpu.memory_space<vmem>>, vector<2x1x4x128xf32>
    %3 = vector.shape_cast %2 : vector<2x1x4x128xf32> to vector<2x4x128xf32>
    %4 = arith.subf %1, %3 : vector<2x4x128xf32>
    %cst = arith.constant 5.000000e-01 : f32
    %5 = vector.broadcast %cst : f32 to vector<2x4x128xf32>
    %6 = arith.mulf %5, %4 : vector<2x4x128xf32>
    %7 = math.tanh %6 : vector<2x4x128xf32>
    %cst_6 = arith.constant 1.000000e+00 : f32
    %8 = vector.broadcast %cst_6 : f32 to vector<2x4x128xf32>
    %9 = arith.addf %7, %8 : vector<2x4x128xf32>
    %cst_7 = arith.constant 5.000000e-01 : f32
    %10 = vector.broadcast %cst_7 : f32 to vector<2x4x128xf32>
    %11 = arith.mulf %10, %9 : vector<2x4x128xf32>
    %12 = vector.extract_strided_slice %11 {offsets = [0, 1, 0], sizes = [2, 3, 128], strides = [1, 1, 1]} : vector<2x4x128xf32> to vector<2x3x128xf32>
    %13 = vector.extract_strided_slice %11 {offsets = [0, 0, 0], sizes = [2, 3, 128], strides = [1, 1, 1]} : vector<2x4x128xf32> to vector<2x3x128xf32>
    %14 = arith.subf %12, %13 : vector<2x3x128xf32>
    %c0_8 = arith.constant 0 : index
    %c0_9 = arith.constant 0 : index
    %c0_10 = arith.constant 0 : index
    %15 = vector.load %arg3[%c0_8, %c0_9, %c0_10] : memref<2x3x128xf32, #tpu.memory_space<vmem>>, vector<2x3x128xf32>
    tpu.vector_store %arg3[%c0_8, %c0_9, %c0_10], %14 {strides = array<i32>} : memref<2x3x128xf32, #tpu.memory_space<vmem>>, vector<2x3x128xf32>,
    return
  }
  func.func @transform_0(%arg0: i32, %arg1: i32) -> (i32, i32, i32, i32) {
    %c0_i32 = arith.constant 0 : i32
    %c0_i32_0 = arith.constant 0 : i32
    %c0_i32_1 = arith.constant 0 : i32
    return %arg0, %c0_i32, %c0_i32_0, %arg1 : i32, i32, i32, i32
  }
  func.func @transform_1(%arg0: i32, %arg1: i32) -> (i32, i32, i32) {
    %c0_i32 = arith.constant 0 : i32
    %c0_i32_0 = arith.constant 0 : i32
    return %arg0, %c0_i32, %arg1 : i32, i32, i32
  }
}

</mosaic_0001>

<bundles_post_ra>
// kernel: tpu_custom_call.1
= control target key start
LH: loop header
LB: loop body
LE: loop exit
PB: predicated region body
PF: predicated region fallthrough
CT: control target
= control target key end

     0   :  { %6 = vsyncpa [#allocation3], 0  ;;  %s609_s0 = inlined_call_operand.hbm [shape: f32[2,2,4,256], index: 0, kind: input, shape index: {}]   ;;  %s610_s1 = inlined_call_operand.vmem [shape: f32[2,3,256], index: 1, kind: output, shape index: {}]  }
   0x1   :  { %8 = vsyncpa [#allocation3 + $0x1], 0  ;;  %s478_s6 = smov 0   ;;  %s480_s7 = smov 0  }
   0x2   :  { %s482_s8 = smov 0   ;;  %s484_s9 = smov 0  }
   0x3   :  { %s486_s10 = smov 0   ;;  %s488_s11 = smov 0  }
   0x4 LB: > { %s305_s12 = sadd.s32 4294967295, %s462_s11   ;;  %s23_s13 = sadd.s32 1, %s458_s10  ;;  %s462_s11 = sphi %s488_s11, %s14_s11   ;;  %s458_s10 = sphi %s486_s10, %s621_s10   ;;  %s454_s9 = sphi %s484_s9, %s620_s9   ;;  %s450_s8 = sphi %s482_s8, %s619_s8   ;;  %s446_s7 = sphi %s480_s7, %s618_s7   ;;  %s442_s6 = sphi %s478_s6, %s617_s6  }
   0x5   : > { %p24_p0 = scmp.ge.s32.totalorder %s23_s13, 2  ;;  %s35_s14 = sadd.s32 1, %s450_s8 }
   0x6   : > { %p42_p1 = scmp.ne.s32.totalorder %s450_s8, %s446_s7  ;;  %p43_p2 = scmp.eq.s32.totalorder %s462_s11, 0 }
   0x7   : > { %s623_s13 = smov (%p24_p0, %s23_s13), 0  ;;  %p48_p4 = scmp.ne.s32.totalorder %s446_s7, %s442_s6 }
   0x8   : > { %p514_p3 = por %p43_p2, %p42_p1  ;;  %s31_s16 = ssub.s32 %s458_s10, %s623_s13 }
   0x9   : > { %p49_p5 = scmp.eq.s32.totalorder %s305_s12, 0  ;;  %p33_p6 = scmp.eq.s32.totalorder %s31_s16, 0 }
   0xa   : > { %p74_p7 = scmp.eq.s32.totalorder %s305_s12, 1  ;;  %p326_p10 = scmp.lt.s32.totalorder %s462_s11, 2 }
   0xb   : > { %p521_p8 = por %p49_p5, %p48_p4  ;;  %s100_s20 = sand.u32 1, %s450_s8  }
   0xc   : > { %s526_s18 = scalar_select %p33_p6, %s450_s8, %s35_s14  }
   0xd   : > { %p528_p9 = por %p74_p7, %p42_p1  ;;  %s310_s21 = sshll.u32 %s458_s10, 6 }
   0xe   : > { %s309_s22 = sshll.u32 %s100_s20, 4  ;;  %s538_s25 = scalar_lea.hbm %s609_s0, %s310_s21 }
   0xf   : > { %s613_s19 = scalar_select %p528_p9, 1, 0 }
  0x10   : > { %s104_s26 = scalar_lea.vmem [#allocation2], %s309_s22  ;;  %p542_p11 = pnand %p326_p10, %p514_p3 }
  0x11   : > { %s113_s27 = sshll.u32 %s104_s26, 4  ;;  %s549_s29 = scalar_lea.sflag [#allocation3], %s100_s20  ;;  %s546_s27 = int_to_ptr.vmem [resolvable:$true] %s113_s27 }
  0x12   : > { %s382_s30 = scalar_lea.hbm %s538_s25, 256  ;;  %p384_p0 = pneg %p542_p11 }
  0x13   : > { %p383_p13 = scmp.ne.s32.totalorder %s538_s25, %s382_s30  ;;  %s387_s4 = scalar_lea.hbm %s609_s0, 512 }
  0x14   : > { %p388_p3 = scmp.lt.u32.totalorder %s538_s25, %s609_s0  ;;  %p389_p4 = scmp.lt.u32.totalorder %s387_s4, %s382_s30 }
  0x15   : > { %p385_p1 = pnand %p384_p0, %p383_p13  ;;  %p391_p6 = scmp.lt.u32.totalorder %s382_s30, %s538_s25 }
  0x16   : > { %p390_p5 = por %p389_p4, %p388_p3 }
  0x17   : > { %p386_p2 = pneg %p385_p1 }
  0x18   : > { %p392_p7 = por %p391_p6, %p390_p5 }
  0x1a   : > { %p393_p10 = pnand %p392_p7, %p386_p2 }
  0x1c   : > { %396 = shalt.err (!%p393_p10)
}
  0x1d   : > { %s397_s12 = scalar_lea.vmem %s546_s27, 256  ;;  %s464_s14 = smov [#allocation2]  }
  0x1e   : > { %p398_p13 = scmp.ne.s32.totalorder %s546_s27, %s397_s12  ;;  %s402_s15 = sshll.u32 %s464_s14, 4  ;;  %s403_s15 = int_to_ptr.vmem [resolvable:$false] %s402_s15 }
  0x1f   : > { %s404_s16 = scalar_lea.vmem %s403_s15, 512  ;;  %p405_p9 = scmp.lt.s32.totalorder %s546_s27, %s403_s15 }
  0x20   : > { %p400_p1 = pnand %p398_p13, %p384_p0  ;;  %p406_p3 = scmp.lt.s32.totalorder %s404_s16, %s397_s12 }
  0x22   : > { %p401_p12 = pneg %p400_p1  ;;  %p407_p4 = por %p406_p3, %p405_p9 }
  0x24   : > { %p408_p5 = pnand %p407_p4, %p401_p12 }
  0x26   : > { %411 = shalt.err (!%p408_p5)
}
  0x27   : > { %s465_s20 = smov 128   ;;  %s466_s21 = smov 64  }
  0x28   : > { %s467_s22 = smov 4   ;;  %p121_p0 = scmp.lt.s32.totalorder %s462_s11, 3 }
  0x29   : > { %325 = dma.hbm_to_vmem [thread:$0]  (!%p542_p11), %s538_s25, 256, %s546_s27, %s549_s29, %s465_s20, %s466_s21, %s467_s22  }
  0x2a   : > { %p615_p2 = scmp.ge.s32.totalorder %s462_s11, 1 }
  0x2c   : > { %p122_p6 = pnand %p615_p2, %p121_p0 }
  0x2d   : > { %s127_s23 = sand.u32 (!%p122_p6), 1, %s446_s7  }
  0x2e   : > { %125 = sbr.rel (%p122_p6) target bundleno = 88 (0x58), region = 24  ;;  %s312_s24 = sshll.u32 (!%p122_p6), %s127_s23, 4 }
  0x2f   : > { %s128_s26 = scalar_lea.sflag (!%p122_p6), [#allocation3], %s127_s23  ;;  %s131_s30 = scalar_lea.vmem (!%p122_p6), [#allocation2], %s312_s24 }
  0x35   : > { %437 = dma.done.wait (%p521_p8), %s128_s26, 256  }
  0x36   : > { %439 = vsyncadd (%p521_p8), %s128_s26, 4294967040  ;;  %v314_v0 = vld [vmem:[%s131_s30 + $0x4] sm:$0xf]  ;;  %v154_v1 = vld [vmem:[%s131_s30] sm:$0xf]  ;;  %s313_s25 = sshll.u32 %s127_s23, 3 }
  0x37   : > { %v315_v2 = vld [vmem:[%s131_s30 + $0xc] sm:$0xf]  ;;  %v156_v3 = vsub.f32 %v314_v0, %v154_v1  ;;  %v155_v4 = vld [vmem:[%s131_s30 + $0x8] sm:$0xf]  ;;  %s148_s17 = scalar_lea.vmem [#allocation4], %s313_s25  ;;  %p616_p8 = scmp.ne.s32.totalorder %s613_s19, 0 }
  0x38   : > { %v157_v5 = vsub.f32 %v315_v2, %v155_v4  ;;  %s317_s27 = sshll.u32 (%p616_p8), %s454_s9, 2 }
  0x39   : > { %v158_v6 = vmul.f32 0.5, %v156_v3  ;;  %s187_s2 = scalar_lea.vmem (%p616_p8), %s610_s1, %s317_s27 }
  0x3a   : > { %v159_v7 = vmul.f32 0.5, %v157_v5 }
  0x3b   : > { %378 = vtanh.f32 %v158_v6 }
  0x3c   : > { %380 = vtanh.f32 %v159_v7 }
  0x45   : > { %v379_v8 = vpop.eup %378 }
  0x46   : > { %v381_v9 = vpop.eup %380  ;;  %v162_v10 = vadd.f32 1.0, %v379_v8 }
  0x47   : > { %v163_v11 = vadd.f32 1.0, %v381_v9 }
  0x48   : > { %v164_v12 = vmul.f32 0.5, %v162_v10 }
  0x49   : > { %v165_v13 = vmul.f32 0.5, %v163_v11  ;;  %182 = sbr.rel (!%p616_p8) target bundleno = 88 (0x58), region = 32 }
  0x4a   : > { %v168_v14 = vrot.slane %v164_v12, 7 }
  0x4b   : > { %v169_v15 = vrot.slane %v165_v13, 7 }
  0x4c   : > { %v172_v16 = vsub.f32 %v164_v12, %v168_v14 }
  0x4d   : > { %v173_v17 = vsub.f32 %v165_v13, %v169_v15 }
  0x4e   : > { %174 = vst [vmem:[%s148_s17 - $0x1] sm:$0xe] %v172_v16 }
  0x4f   : > { %175 = vst [vmem:[%s148_s17 + $0x3] sm:$0xe] %v173_v17 }
  0x55   : > { %v203_v18 = vld [vmem:[%s148_s17] sm:$0xf] }
  0x56   : > { %v205_v19 = vld [vmem:[%s148_s17 + $0x4] sm:$0xf]  ;;  %204 = vst [vmem:[%s187_s2] sm:$0xf] %v203_v18 }
  0x57   : > { %206 = vst [vmem:[%s187_s2 + $0x8] sm:$0xf] %v205_v19 }
  0x58 PF: > { %s14_s11 = sadd.s32 1, %s462_s11   ;;  %s617_s6 = smov %s446_s7 }
  0x59   : > { %p11_p9 = scmp.ge.s32.totalorder %s14_s11, 4   ;;  %s618_s7 = smov %s450_s8 }
  0x5a   : > { %s619_s8 = smov %s526_s18  ;;  %s620_s9 = smov %s458_s10 }
  0x5b   : > { %s621_s10 = smov %s623_s13  ;;  %13 = sbr.rel (!%p11_p9) target bundleno = 4 (0x4), region = 106 }
  0x62   :  { %243 = vsyncpa [#allocation3], 1 }
  0x63   :  { %245 = vsyncpa [#allocation3 + $0x1], 1 }

</bundles_post_ra>
